<compile_context>
chip_gen: v5e
topology: v5e:2x2
jax: 0.10.0
libtpu: 0.0.40
codegen_flags: <defaults>
</compile_context>

<pallas_src>
import jax
import jax.numpy as jnp
from jax.experimental import pallas as pl
from jax.experimental.pallas import tpu as pltpu


def _round_up(a, m):
    return ((a + m - 1) // m) * m


def _cdiv(a, b):
    return (a + b - 1) // b


def _iwt_kernel(x_ref, ev_ref, od_ref, o_ref):
    # x_ref : (1, 4, r_t, W)   four wavelet sub-bands, rows indexed by c*H + h
    # ev_ref: (ck, 2*ck) bf16  scatter: lane w -> output lane 2w,   value 0.5
    # od_ref: (ck, 2*ck) bf16  scatter: lane w -> output lane 2w+1, value 0.5
    # o_ref : (1, r_t, 4W)     rows: [:2W] = even image row, [2W:] = odd row
    w = x_ref.shape[3]
    ck = ev_ref.shape[0]                       # 128 (or W when W % 128 != 0)

    ev = ev_ref[...].astype(jnp.float32)       # 0.0 / 0.5 exact in bf16 & f32
    od = od_ref[...].astype(jnp.float32)

    def scatter(u, m):
        # Exact: at HIGHEST the f32 operand splits exactly into bf16 terms and
        # every matrix column has a single 0.5 (power-of-two) entry, so
        # u @ m == (u / 2) scattered, bit-exact in f32.
        return jnp.dot(u, m, precision=jax.lax.Precision.HIGHEST,
                       preferred_element_type=jnp.float32)

    # Static, fully unrolled loop over 128-lane input chunks (single iteration
    # when W % 128 != 0).  All slice offsets/sizes are 128-aligned when ck=128.
    for j in range(w // ck):
        lo = j * ck
        sl = slice(lo, lo + ck)
        x1 = x_ref[0, 0, :, sl].astype(jnp.float32)
        x2 = x_ref[0, 1, :, sl].astype(jnp.float32)
        x3 = x_ref[0, 2, :, sl].astype(jnp.float32)
        x4 = x_ref[0, 3, :, sl].astype(jnp.float32)

        # butterfly: 8 adds per 4 outputs (0.5 scale lives in the matrices)
        s12 = x1 + x2
        d12 = x1 - x2
        s34 = x3 + x4
        d34 = x3 - x4
        a = d12 - d34   # -> out[0::2, 0::2]
        b = s12 - s34   # -> out[0::2, 1::2]
        c = d12 + d34   # -> out[1::2, 0::2]
        d = s12 + s34   # -> out[1::2, 1::2]

        top = scatter(a, ev) + scatter(b, od)   # even image rows, q-interleaved
        bot = scatter(c, ev) + scatter(d, od)   # odd  image rows, q-interleaved

        o_ref[0, :, 2 * lo:2 * lo + 2 * ck] = top
        o_ref[0, :, 2 * w + 2 * lo:2 * w + 2 * lo + 2 * ck] = bot


def _pick_row_tile(n_rows, w, batch, budget_bytes=8 << 20):
    """Largest multiple-of-8 row tile whose lane-padded f32 footprint
    (4 input sub-band tiles + output tile, single buffer) fits the budget.
    Does NOT need to divide n_rows (ragged last block handled by Pallas)."""
    lane_in = _round_up(w, 128)
    lane_out = _round_up(4 * w, 128)
    per_row = 4 * (4 * lane_in + lane_out)              # f32 bytes per row
    r_t = min(n_rows, max(8, budget_bytes // per_row))
    if r_t < n_rows:
        r_t = max(8, (r_t // 8) * 8)                    # multiple of 8
    # v7x megacore: make sure there are >= 2 grid steps when possible so the
    # "parallel" axes can shard across both TensorCores.
    if batch * _cdiv(n_rows, r_t) < 2 and n_rows >= 16:
        r_t = _round_up(_cdiv(n_rows, 2), 8)
    return r_t


def _vmem_limit_bytes(r_t, w, ck):
    """Scoped-VMEM limit: double-buffered in/out tiles + scatter matrices +
    slack, clamped to a range safe on v5e/v6e (128 MiB) and v7x (64 MiB)."""
    lane_in = _round_up(w, 128)
    lane_out = _round_up(4 * w, 128)
    in_tile = 4 * r_t * lane_in * 4
    out_tile = r_t * lane_out * 4
    mats = 2 * _round_up(ck, 8) * _round_up(2 * ck, 128) * 2   # bf16
    need = 2 * (in_tile + out_tile + mats) + (4 << 20)
    return int(min(max(need, 32 << 20), 64 << 20))


def iwt(x):
    """Inverse wavelet transform: (B, 4C, H, W) -> (B, C, 2H, 2W) float32."""
    B, C4, H, W = x.shape
    assert C4 % 4 == 0, "channel count must be a multiple of 4"
    C = C4 // 4
    R = C * H                                           # fused (channel, row)

    xg = x.reshape(B, 4, R, W)                          # free contiguous view
    r_t = _pick_row_tile(R, W, B)
    grid = (B, _cdiv(R, r_t))

    # Constant 0/0.5 column-interleave matrices, one 128-lane chunk wide
    # (full width only when W is not a multiple of 128).
    ck = 128 if (W % 128 == 0) else W
    wi = jnp.arange(ck, dtype=jnp.int32)[:, None]
    mi = jnp.arange(2 * ck, dtype=jnp.int32)[None, :]
    ev = jnp.where(mi == 2 * wi, 0.5, 0.0).astype(jnp.bfloat16)
    od = jnp.where(mi == 2 * wi + 1, 0.5, 0.0).astype(jnp.bfloat16)

    out = pl.pallas_call(
        _iwt_kernel,
        out_shape=jax.ShapeDtypeStruct((B, R, 4 * W), jnp.float32),
        grid=grid,
        in_specs=[
            pl.BlockSpec((1, 4, r_t, W), lambda b, j: (b, 0, j, 0)),
            pl.BlockSpec((ck, 2 * ck), lambda b, j: (0, 0)),
            pl.BlockSpec((ck, 2 * ck), lambda b, j: (0, 0)),
        ],
        out_specs=pl.BlockSpec((1, r_t, 4 * W), lambda b, j: (b, j, 0)),
        compiler_params=pltpu.CompilerParams(
            dimension_semantics=("parallel", "parallel"),
            vmem_limit_bytes=_vmem_limit_bytes(r_t, W, ck)),
    )(xg, ev, od)

    return out.reshape(B, C, 2 * H, 2 * W)              # free contiguous view


def iwt_ref(x):
    # pure-JAX reference mirroring the PyTorch iwt_init
    B, C4, H, W = x.shape
    C = C4 // 4
    x1 = x[:, 0:C] / 2
    x2 = x[:, C:2 * C] / 2
    x3 = x[:, 2 * C:3 * C] / 2
    x4 = x[:, 3 * C:4 * C] / 2
    h = jnp.zeros((B, C, 2 * H, 2 * W), jnp.float32)
    h = h.at[:, :, 0::2, 0::2].set(x1 - x2 - x3 + x4)
    h = h.at[:, :, 1::2, 0::2].set(x1 - x2 + x3 - x4)
    h = h.at[:, :, 0::2, 1::2].set(x1 + x2 - x3 - x4)
    h = h.at[:, :, 1::2, 1::2].set(x1 + x2 + x3 + x4)
    return h


if __name__ == "__main__":
    key = jax.random.PRNGKey(0)
    # B=2, in_channels=4 (-> out_channels=1), H=W=16 ==> output (2, 1, 32, 32)
    x = jax.random.normal(key, (2, 4, 16, 16), dtype=jnp.float32)

    out = jax.block_until_ready(jax.jit(iwt)(x))

    ref = iwt_ref(x)
    assert out.shape == (2, 1, 32, 32), out.shape
    assert jnp.allclose(out, ref, atol=1e-5, rtol=1e-5), "mismatch vs reference"
    print("KERNEL_OK")
</pallas_src>

<mosaic_0001>
module attributes {stable_mosaic.version = 11 : i64} {
  func.func @_iwt_kernel(%arg0: i32, %arg1: i32, %arg2: memref<1x4x16x16xf32, #tpu.memory_space<vmem>>, %arg3: memref<16x32xbf16, #tpu.memory_space<vmem>>, %arg4: memref<16x32xbf16, #tpu.memory_space<vmem>>, %arg5: memref<1x16x64xf32, #tpu.memory_space<vmem>>) attributes {dimension_semantics = [#tpu.dimension_semantics<parallel>, #tpu.dimension_semantics<parallel>], iteration_bounds = array<i64: 2, 1>, scalar_prefetch = 0 : i64, scratch_operands = 0 : i64, tpu.core_type = #tpu.core_type<tc>, window_params = [{transform_indices = @transform_0, window_bounds = array<i64: 1, 4, 16, 16>}, {pipeline_mode = #tpu.pipeline_mode<synchronous>, transform_indices = @transform_1, window_bounds = array<i64: 16, 32>}, {pipeline_mode = #tpu.pipeline_mode<synchronous>, transform_indices = @transform_2, window_bounds = array<i64: 16, 32>}, {transform_indices = @transform_3, window_bounds = array<i64: 1, 16, 64>}]} {
    %c0 = arith.constant 0 : index
    %c0_0 = arith.constant 0 : index
    %0 = vector.load %arg3[%c0, %c0_0] : memref<16x32xbf16, #tpu.memory_space<vmem>>, vector<16x32xbf16>
    %1 = arith.extf %0 : vector<16x32xbf16> to vector<16x32xf32>
    %c0_1 = arith.constant 0 : index
    %c0_2 = arith.constant 0 : index
    %2 = vector.load %arg4[%c0_1, %c0_2] : memref<16x32xbf16, #tpu.memory_space<vmem>>, vector<16x32xbf16>
    %3 = arith.extf %2 : vector<16x32xbf16> to vector<16x32xf32>
    %c0_3 = arith.constant 0 : index
    %c0_4 = arith.constant 0 : index
    %c0_5 = arith.constant 0 : index
    %c0_6 = arith.constant 0 : index
    %4 = vector.load %arg2[%c0_3, %c0_4, %c0_5, %c0_6] : memref<1x4x16x16xf32, #tpu.memory_space<vmem>>, vector<1x1x16x16xf32>
    %5 = vector.shape_cast %4 : vector<1x1x16x16xf32> to vector<16x16xf32>
    %c0_7 = arith.constant 0 : index
    %c1 = arith.constant 1 : index
    %c0_8 = arith.constant 0 : index
    %c0_9 = arith.constant 0 : index
    %6 = vector.load %arg2[%c0_7, %c1, %c0_8, %c0_9] : memref<1x4x16x16xf32, #tpu.memory_space<vmem>>, vector<1x1x16x16xf32>
    %7 = vector.shape_cast %6 : vector<1x1x16x16xf32> to vector<16x16xf32>
    %c0_10 = arith.constant 0 : index
    %c2 = arith.constant 2 : index
    %c0_11 = arith.constant 0 : index
    %c0_12 = arith.constant 0 : index
    %8 = vector.load %arg2[%c0_10, %c2, %c0_11, %c0_12] : memref<1x4x16x16xf32, #tpu.memory_space<vmem>>, vector<1x1x16x16xf32>
    %9 = vector.shape_cast %8 : vector<1x1x16x16xf32> to vector<16x16xf32>
    %c0_13 = arith.constant 0 : index
    %c3 = arith.constant 3 : index
    %c0_14 = arith.constant 0 : index
    %c0_15 = arith.constant 0 : index
    %10 = vector.load %arg2[%c0_13, %c3, %c0_14, %c0_15] : memref<1x4x16x16xf32, #tpu.memory_space<vmem>>, vector<1x1x16x16xf32>
    %11 = vector.shape_cast %10 : vector<1x1x16x16xf32> to vector<16x16xf32>
    %12 = arith.addf %5, %7 : vector<16x16xf32>
    %13 = arith.subf %5, %7 : vector<16x16xf32>
    %14 = arith.addf %9, %11 : vector<16x16xf32>
    %15 = arith.subf %9, %11 : vector<16x16xf32>
    %16 = arith.subf %13, %15 : vector<16x16xf32>
    %17 = arith.subf %12, %14 : vector<16x16xf32>
    %18 = arith.addf %13, %15 : vector<16x16xf32>
    %19 = arith.addf %12, %14 : vector<16x16xf32>
    %cst = arith.constant dense<0.000000e+00> : vector<16x32xf32>
    %20 = tpu.matmul %16, %1, %cst {dimension_numbers = #tpu.dot_dimension_numbers<[1], [0], [0], [1], [0, 0, 1, 1], [], []>, precision = #tpu.contract_precision<fp32>} : vector<16x16xf32>, vector<16x32xf32>, vector<16x32xf32> -> vector<16x32xf32>
    %cst_16 = arith.constant dense<0.000000e+00> : vector<16x32xf32>
    %21 = tpu.matmul %17, %3, %cst_16 {dimension_numbers = #tpu.dot_dimension_numbers<[1], [0], [0], [1], [0, 0, 1, 1], [], []>, precision = #tpu.contract_precision<fp32>} : vector<16x16xf32>, vector<16x32xf32>, vector<16x32xf32> -> vector<16x32xf32>
    %22 = arith.addf %20, %21 : vector<16x32xf32>
    %cst_17 = arith.constant dense<0.000000e+00> : vector<16x32xf32>
    %23 = tpu.matmul %18, %1, %cst_17 {dimension_numbers = #tpu.dot_dimension_numbers<[1], [0], [0], [1], [0, 0, 1, 1], [], []>, precision = #tpu.contract_precision<fp32>} : vector<16x16xf32>, vector<16x32xf32>, vector<16x32xf32> -> vector<16x32xf32>
    %cst_18 = arith.constant dense<0.000000e+00> : vector<16x32xf32>
    %24 = tpu.matmul %19, %3, %cst_18 {dimension_numbers = #tpu.dot_dimension_numbers<[1], [0], [0], [1], [0, 0, 1, 1], [], []>, precision = #tpu.contract_precision<fp32>} : vector<16x16xf32>, vector<16x32xf32>, vector<16x32xf32> -> vector<16x32xf32>
    %25 = arith.addf %23, %24 : vector<16x32xf32>
    %c0_19 = arith.constant 0 : index
    %c0_20 = arith.constant 0 : index
    %c0_21 = arith.constant 0 : index
    %26 = vector.load %arg5[%c0_19, %c0_20, %c0_21] : memref<1x16x64xf32, #tpu.memory_space<vmem>>, vector<1x16x32xf32>
    %27 = vector.shape_cast %26 : vector<1x16x32xf32> to vector<16x32xf32>
    %28 = vector.shape_cast %22 : vector<16x32xf32> to vector<1x16x32xf32>
    tpu.vector_store %arg5[%c0_19, %c0_20, %c0_21], %28 {strides = array<i32>} : memref<1x16x64xf32, #tpu.memory_space<vmem>>, vector<1x16x32xf32>,
    %c0_22 = arith.constant 0 : index
    %c0_23 = arith.constant 0 : index
    %c32 = arith.constant 32 : index
    %29 = vector.load %arg5[%c0_22, %c0_23, %c32] : memref<1x16x64xf32, #tpu.memory_space<vmem>>, vector<1x16x32xf32>
    %30 = vector.shape_cast %29 : vector<1x16x32xf32> to vector<16x32xf32>
    %31 = vector.shape_cast %25 : vector<16x32xf32> to vector<1x16x32xf32>
    tpu.vector_store %arg5[%c0_22, %c0_23, %c32], %31 {strides = array<i32>} : memref<1x16x64xf32, #tpu.memory_space<vmem>>, vector<1x16x32xf32>,
    return
  }
  func.func @transform_0(%arg0: i32, %arg1: i32) -> (i32, i32, i32, i32) {
    %c0_i32 = arith.constant 0 : i32
    %c0_i32_0 = arith.constant 0 : i32
    %c0_i32_1 = arith.constant 0 : i32
    return %arg0, %c0_i32, %arg1, %c0_i32_0 : i32, i32, i32, i32
  }
  func.func @transform_1(%arg0: i32, %arg1: i32) -> (i32, i32) {
    %c0_i32 = arith.constant 0 : i32
    %c0_i32_0 = arith.constant 0 : i32
    %c0_i32_1 = arith.constant 0 : i32
    return %c0_i32, %c0_i32_0 : i32, i32
  }
  func.func @transform_2(%arg0: i32, %arg1: i32) -> (i32, i32) {
    %c0_i32 = arith.constant 0 : i32
    %c0_i32_0 = arith.constant 0 : i32
    %c0_i32_1 = arith.constant 0 : i32
    return %c0_i32, %c0_i32_0 : i32, i32
  }
  func.func @transform_3(%arg0: i32, %arg1: i32) -> (i32, i32, i32) {
    %c0_i32 = arith.constant 0 : i32
    %c0_i32_0 = arith.constant 0 : i32
    return %arg0, %arg1, %c0_i32 : i32, i32, i32
  }
}

</mosaic_0001>

<bundles_post_ra>
// kernel: iwt.1
= control target key start
LH: loop header
LB: loop body
LE: loop exit
PB: predicated region body
PF: predicated region fallthrough
CT: control target
= control target key end

     0   :  { %8 = vsyncpa [#allocation3], 0  ;;  %s1532_s0 = inlined_call_operand.hbm [shape: f32[2,4,16,16], index: 0, kind: input, shape index: {}]   ;;  %s1533_s1 = inlined_call_operand.vmem [shape: bf16[16,32], index: 1, kind: input, shape index: {}]   ;;  %s1534_s2 = inlined_call_operand.vmem [shape: bf16[16,32], index: 2, kind: input, shape index: {}]   ;;  %s1535_s3 = inlined_call_operand.vmem [shape: f32[2,16,64], index: 3, kind: output, shape index: {}]  }
   0x1   :  { %10 = vsyncpa [#allocation3 + $0x1], 0  ;;  %s1294_s12 = smov 0   ;;  %s1296_s13 = smov 0  }
   0x2   :  { %s1298_s14 = smov 0   ;;  %s1300_s15 = smov 0  }
   0x3   :  { %s1302_s16 = smov 0   ;;  %s1304_s17 = smov 0  }
   0x4 LB: > { %s1102_s18 = sadd.s32 4294967295, %s1269_s17   ;;  %s28_s19 = sadd.s32 1, %s1265_s16  ;;  %s1269_s17 = sphi %s1304_s17, %s16_s17   ;;  %s1265_s16 = sphi %s1302_s16, %s1542_s16   ;;  %s1261_s15 = sphi %s1300_s15, %s1541_s15   ;;  %s1257_s14 = sphi %s1298_s14, %s1540_s14   ;;  %s1253_s13 = sphi %s1296_s13, %s1539_s13   ;;  %s1249_s12 = sphi %s1294_s12, %s1538_s12  }
   0x5   : > { %p30_p0 = scmp.ge.s32.totalorder %s28_s19, 2  ;;  %s37_s20 = sadd.s32 1, %s1257_s14 }
   0x6   : > { %p44_p1 = scmp.ne.s32.totalorder %s1257_s14, %s1253_s13  ;;  %p45_p2 = scmp.eq.s32.totalorder %s1269_s17, 0 }
   0x7   : > { %s1544_s19 = smov (%p30_p0, %s28_s19), 0  ;;  %p50_p4 = scmp.ne.s32.totalorder %s1253_s13, %s1249_s12 }
   0x8   : > { %p1330_p3 = por %p45_p2, %p44_p1  ;;  %s32_s22 = ssub.s32 %s1265_s16, %s1544_s19 }
   0x9   : > { %p51_p5 = scmp.eq.s32.totalorder %s1102_s18, 0  ;;  %p35_p6 = scmp.eq.s32.totalorder %s32_s22, 0 }
   0xa   : > { %p1137_p8 = scmp.lt.s32.totalorder %s1269_s17, 2  ;;  %s150_s25 = sand.u32 1, %s1257_s14  }
   0xb   : > { %p1337_p7 = por %p51_p5, %p50_p4  ;;  %s1121_s26 = sshll.u32 %s1265_s16, 6 }
   0xc   : > { %s1343_s24 = scalar_select %p35_p6, %s1257_s14, %s37_s20  }
   0xd   : > { %s1106_s27 = sshll.u32 %s150_s25, 6  ;;  %s161_s30 = scalar_lea.hbm %s1532_s0, %s1121_s26 }
   0xe   : > { %s162_s4 = sshll.u32 %s161_s30, 4  ;;  %s154_s5 = scalar_lea.vmem [#allocation2], %s1106_s27  ;;  %s163_s4 = int_to_ptr.hbm [resolvable:$true] %s162_s4 }
   0xf   : > { %s164_s6 = sshll.u32 %s154_s5, 4  ;;  %p1134_p9 = pnand %p1137_p8, %p1330_p3  ;;  %s165_s6 = int_to_ptr.vmem [resolvable:$true] %s164_s6 }
  0x10   : > { %p1109_p10 = scmp.ge.s32.totalorder %s1269_s17, 1  ;;  %p172_p11 = scmp.lt.s32.totalorder %s1269_s17, 3 }
  0x11   : > { %s151_s7 = scalar_lea.sflag [#allocation3], %s150_s25  ;;  %s1271_s8 = smov 128  }
  0x12   : > { %s1272_s9 = smov 8   ;;  %p173_p12 = pnand %p1109_p10, %p172_p11 }
  0x13   : > { %1136 = dma.hbm_to_vmem [thread:$0]  (!%p1134_p9), %s163_s4, 1024, %s165_s6, %s151_s7, %s1271_s8, %s1271_s8, %s1272_s9  }
  0x14   : > { %176 = sbr.rel (%p173_p12) target bundleno = 382 (0x17e), region = 32  ;;  %s178_s10 = sand.u32 (!%p173_p12), 1, %s1253_s13  }
  0x15   : > { %s1110_s11 = sshll.u32 (!%p173_p12), %s178_s10, 6  ;;  %s179_s12 = scalar_lea.sflag (!%p173_p12), [#allocation3], %s178_s10 }
  0x16   : > { %s182_s18 = scalar_lea.vmem (!%p173_p12), [#allocation2], %s1110_s11 }
  0x19   : > { %1244 = dma.done.wait (%p1337_p7), %s179_s12, 1024  }
  0x1a   : > { %1246 = vsyncadd (%p1337_p7), %s179_s12, 4294966272  ;;  %v1128_v0 = vld [vmem:[%s1534_s2] sm:$0xff]   ;;  %v1113_v2 = vld [vmem:[%s182_s18 + $0x10] sm:$0xff]  ;;  %vm256_vm0 = vcmask 130048   ;;  %p212_p13 = scmp.lt.s32.totalorder %s1261_s15, 1  ;;  %vm993_vm1 = vcmask 261120  }
  0x1b   : > { %v229_v1 = vld [vmem:[%s182_s18] sm:$0xff]  ;;  %v1362_v3 = vunpack.c.h.bf16 %v1128_v0  ;;  %v1364_v4 = vunpack.c.l.bf16 %v1128_v0  ;;  %v1117_v6 = vld [vmem:[%s182_s18 + $0x30] sm:$0xff]  ;;  %v230_v13 = vld [vmem:[%s182_s18 + $0x8] sm:$0xff]  ;;  %vm1004_vm2 = vcmask 523520  }
  0x1c   : > { %v1115_v5 = vld [vmem:[%s182_s18 + $0x20] sm:$0xff]  ;;  %v1366_v7 = vadd.f32 %v1113_v2, %v229_v1  ;;  %v1368_v8 = vsub.f32 %v229_v1, %v1113_v2  ;;  %v1114_v14 = vld [vmem:[%s182_s18 + $0x18] sm:$0xff]  ;;  %v1116_v15 = vld [vmem:[%s182_s18 + $0x28] sm:$0xff]  ;;  %s1546_s15 = smov (!%p212_p13, %s1261_s15), 1 }
  0x1d   : > { %v1124_v9 = vld [vmem:[%s1533_s1] sm:$0xff]   ;;  %v1373_v10 = vadd.f32 %v1117_v6, %v1115_v5  ;;  %v1375_v11 = vsub.f32 %v1115_v5, %v1117_v6  ;;  %v1383_v17 = vsub.f32 %v1362_v3, %v1362_v3  ;;  %v1387_v18 = vsub.f32 %v1364_v4, %v1364_v4  ;;  %372 = vmatpush.msra.mxu3 %v1362_v3  ;;  %v1118_v19 = vld [vmem:[%s182_s18 + $0x38] sm:$0xff]  ;;  %s1122_s23 = sshll.u32 %s1546_s15, 4  ;;  %s1273_s15 = smov 32  }
  0x1e   : > { %v1377_v12 = vunpack.c.h.bf16 %v1124_v9  ;;  %v1379_v16 = vunpack.c.l.bf16 %v1124_v9  ;;  %277 = vmatpush.msra.mxu0 %v1362_v3  ;;  %v1391_v20 = vadd.f32 %v1114_v14, %v230_v13  ;;  %v1399_v23 = vsub.f32 %v230_v13, %v1114_v14  ;;  %s1508_s28 = scalar_lea.vmem %s1535_s3, %s1122_s23 }
  0x1f   : > { %v250_v21 = vsub.f32 %v1366_v7, %v1373_v10  ;;  %344 = vmatpush.msra.mxu2 %v1383_v17  ;;  %v1403_v24 = vand.u32 4294901760, %v1383_v17  ;;  %373 = vmatpush.msra.mxu3 %v1364_v4  ;;  %v1407_v25 = vand.u32 4294901760, %v1387_v18  ;;  %v1409_v26 = vadd.f32 %v1118_v19, %v1116_v15 }
  0x20   : > { %v1397_v22 = vsub.f32 %v1377_v12, %v1377_v12  ;;  %v1411_v27 = vsub.f32 %v1116_v15, %v1118_v19  ;;  %278 = vmatpush.msra.mxu0 %v1364_v4  ;;  %v1420_v30 = vsub.f32 %v1379_v16, %v1379_v16  ;;  %v248_v31 = vsub.f32 %v1368_v8, %v1375_v11 }
  0x21   : > { %v258_v28 = vsel %vm256_vm0, %v250_v21, 0  ;;  %346 = vmatpush.msra.mxu2 %v1387_v18  ;;  %v312_v33 = vsub.f32 %v1383_v17, %v1403_v24  ;;  %v317_v34 = vsub.f32 %v1387_v18, %v1407_v25  ;;  %v251_v35 = vsub.f32 %v1391_v20, %v1409_v26 }
  0x22   : > { %v1416_v29 = vand.u32 4294901760, %v1397_v22  ;;  %v1425_v32 = vand.u32 4294901760, %v258_v28  ;;  %403 = vmatpush.msrb.mxu0 %v1403_v24  ;;  %v1438_v37 = vand.u32 4294901760, %v1420_v30  ;;  %v442_v38 = vsel %vm256_vm0, %v248_v31, 0 }
  0x23   : > { %461 = vmatpush.msrb.mxu2 %v1377_v12  ;;  %v249_v39 = vsub.f32 %v1399_v23, %v1411_v27  ;;  %v313_v41 = vand.u32 4294901760, %v312_v33  ;;  %v318_v42 = vand.u32 4294901760, %v317_v34  ;;  %v261_v43 = vsel %vm256_vm0, %v251_v35, 0 }
  0x24   : > { %v496_v36 = vsub.f32 %v1397_v22, %v1416_v29  ;;  %v280_v40 = vsub.f32 %v258_v28, %v1425_v32  ;;  %406 = vmatpush.msrb.mxu0 %v1407_v25  ;;  %v287_v45 = vand.u32 4294901760, %v261_v43  ;;  %v501_v46 = vsub.f32 %v1420_v30, %v1438_v37 }
  0x25   : > { %462 = vmatpush.msrb.mxu2 %v1379_v16  ;;  %v463_v47 = vand.u32 4294901760, %v442_v38  ;;  %314 = vmatpush.msra.mxu1 %v313_v41  ;;  %v445_v52 = vsel %vm256_vm0, %v249_v39, 0  ;;  %v254_v2 = vadd.f32 %v1373_v10, %v1366_v7  ;;  %v255_v9 = vadd.f32 %v1409_v26, %v1391_v20 }
  0x26   : > { %v1446_v44 = vand.u32 4294901760, %v496_v36  ;;  %349 = vmatmul.f32.vlgmr.msra.gmra.mxu2 %v280_v40  ;;  %v281_v48 = vand.u32 4294901760, %v280_v40  ;;  %v288_v49 = vsub.f32 %v261_v43, %v287_v45  ;;  %v1452_v50 = vand.u32 4294901760, %v501_v46 }
  0x27   : > { %v464_v51 = vsub.f32 %v442_v38, %v463_v47  ;;  %587 = vmatpush.msra.mxu2 %v1416_v29  ;;  %319 = vmatpush.msra.mxu1 %v318_v42  ;;  %v471_v57 = vand.u32 4294901760, %v445_v52  ;;  %v626_v5 = vsel %vm256_vm0, %v254_v2, 0  ;;  %v252_v7 = vadd.f32 %v1375_v11, %v1368_v8 }
  0x28   : > { %498 = vmatpush.msrb.mxu3 %v1446_v44  ;;  %v282_v53 = vsub.f32 %v280_v40, %v281_v48  ;;  %321 = vmatmul.f32.vlgmr.msra.gmra.mxu1 %v1425_v32  ;;  %v289_v54 = vand.u32 4294901760, %v288_v49  ;;  %v647_v6 = vand.u32 4294901760, %v626_v5  ;;  %v629_v13 = vsel %vm256_vm0, %v255_v9, 0 }
  0x29   : > { %377 = vmatmul.f32.vlgmr.msra.gmra.mxu3 %v281_v48  ;;  %430 = vmatpush.msrb.mxu1 %v1362_v3  ;;  %v465_v56 = vand.u32 4294901760, %v464_v51  ;;  %v472_v60 = vsub.f32 %v445_v52, %v471_v57  ;;  %v655_v15 = vand.u32 4294901760, %v629_v13  ;;  %v253_v11 = vadd.f32 %v1411_v27, %v1399_v23 }
  0x2a   : > { %503 = vmatpush.msrb.mxu3 %v1452_v50  ;;  %v283_v55 = vand.u32 4294901760, %v282_v53  ;;  %590 = vmatpush.msra.mxu2 %v1438_v37  ;;  %v290_v58 = vsub.f32 %v288_v49, %v289_v54  ;;  %v648_v10 = vsub.f32 %v626_v5, %v647_v6 }
  0x2b   : > { %431 = vmatpush.msrb.mxu1 %v1364_v4  ;;  %v466_v59 = vsub.f32 %v464_v51, %v465_v56  ;;  %v473_v63 = vand.u32 4294901760, %v472_v60  ;;  %v813_v19 = vsel %vm256_vm0, %v253_v11, 0 }
  0x2c   : > { %614 = vmatpush.msra.mxu3 %v1377_v12  ;;  %284 = vmatmul.f32.vlgmr.msra.gmra.mxu0 %v283_v55  ;;  %v291_v61 = vand.u32 4294901760, %v290_v58  ;;  %v649_v14 = vand.u32 4294901760, %v648_v10 }
  0x2d   : > { %528 = vmatpush.msra.mxu0 %v1397_v22  ;;  %556 = vmatpush.msra.mxu1 %v1377_v12  ;;  %v467_v62 = vand.u32 4294901760, %v466_v59  ;;  %v474_v0 = vsub.f32 %v472_v60, %v473_v63 }
  0x2e   : > { %354 = vmatmul.f32.gmra.mxu2 %v288_v49  ;;  %615 = vmatpush.msra.mxu3 %v1379_v16 }
  0x2f   : > { %530 = vmatpush.msra.mxu0 %v1420_v30  ;;  %557 = vmatpush.msra.mxu1 %v1379_v16  ;;  %v475_v1 = vand.u32 4294901760, %v474_v0 }
  0x30   : > { %325 = vmatmul.f32.gmra.mxu1 %v287_v45 }
  0x31   : > { %383 = vmatmul.f32.gmra.mxu3 %v289_v54 }
  0x34   : > { %292 = vmatmul.f32.gmra.mxu0 %v291_v61 }
  0x36   : > { %468 = vmatmul.f32.vlgmr.msrb.gmra.mxu2 %v467_v62 }
  0x37   : > { %712 = vmatpush.msrb.mxu2 %v1383_v17  ;;  %v650_v17 = vsub.f32 %v648_v10, %v649_v14 }
  0x38   : > { %433 = vmatmul.f32.vlgmr.msrb.gmra.mxu1 %v1425_v32 }
  0x39   : > { %505 = vmatmul.f32.vlgmr.msrb.gmra.mxu3 %v463_v47  ;;  %682 = vmatpush.msrb.mxu1 %v313_v41  ;;  %v651_v20 = vand.u32 4294901760, %v650_v17 }
  0x3a   : > { %740 = vmatpush.msrb.mxu3 %v1362_v3  ;;  %714 = vmatpush.msrb.mxu2 %v1387_v18 }
  0x3b   : > { %687 = vmatpush.msrb.mxu1 %v318_v42 }
  0x3c   : > { %741 = vmatpush.msrb.mxu3 %v1364_v4  ;;  %408 = vmatmul.f32.vlgmr.msrb.gmra.mxu0 %v1425_v32 }
  0x3d   : > { %645 = vmatpush.msrb.mxu0 %v1362_v3 }
  0x3e   : > { %476 = vmatmul.f32.gmra.mxu2 %v475_v1 }
  0x3f   : > { %646 = vmatpush.msrb.mxu0 %v1364_v4 }
  0x40   : > { %437 = vmatmul.f32.gmra.mxu1 %v287_v45 }
  0x41   : > { %509 = vmatmul.f32.gmra.mxu3 %v471_v57 }
  0x44   : > { %412 = vmatmul.f32.gmra.mxu0 %v287_v45 }
  0x46   : > { %592 = vmatmul.f32.vlgmr.msra.gmra.mxu2 %v463_v47 }
  0x47   : > { %829 = vmatpush.msra.mxu2 %v1377_v12 }
  0x48   : > { %561 = vmatmul.f32.vlgmr.msra.gmra.mxu1 %v465_v56 }
  0x49   : > { %617 = vmatmul.f32.vlgmr.msra.gmra.mxu3 %v463_v47  ;;  %798 = vmatpush.msra.mxu1 %v1362_v3  ;;  %v810_v3 = vsel %vm256_vm0, %v252_v7, 0 }
  0x4a   : > { %866 = vmatpush.msra.mxu3 %v1446_v44  ;;  %830 = vmatpush.msra.mxu2 %v1379_v16  ;;  %v831_v8 = vand.u32 4294901760, %v810_v3 }
  0x4b   : > { %799 = vmatpush.msra.mxu1 %v1364_v4  ;;  %v656_v4 = vsub.f32 %v629_v13, %v655_v15 }
  0x4c   : > { %871 = vmatpush.msra.mxu3 %v1452_v50  ;;  %533 = vmatmul.f32.vlgmr.msra.gmra.mxu0 %v464_v51  ;;  %v832_v18 = vsub.f32 %v810_v3, %v831_v8 }
  0x4d   : > { %771 = vmatpush.msra.mxu0 %v1403_v24  ;;  %v657_v21 = vand.u32 4294901760, %v656_v4 }
  0x4e   : > { %596 = vmatmul.f32.gmra.mxu2 %v471_v57  ;;  %v833_v24 = vand.u32 4294901760, %v832_v18 }
  0x4f   : > { %774 = vmatpush.msra.mxu0 %v1407_v25  ;;  %v839_v25 = vand.u32 4294901760, %v813_v19  ;;  %v658_v23 = vsub.f32 %v656_v4, %v657_v21 }
  0x50   : > { %567 = vmatmul.f32.gmra.mxu1 %v473_v63  ;;  %v834_v26 = vsub.f32 %v832_v18, %v833_v24 }
  0x51   : > { %621 = vmatmul.f32.gmra.mxu3 %v471_v57  ;;  %v840_v27 = vsub.f32 %v813_v19, %v839_v25  ;;  %v659_v28 = vand.u32 4294901760, %v658_v23 }
  0x54   : > { %538 = vmatmul.f32.gmra.mxu0 %v472_v60 }
  0x56   : > { %717 = vmatmul.f32.vlgmr.msrb.gmra.mxu2 %v648_v10 }
  0x57   : > { %955 = vmatpush.msrb.mxu2 %v1416_v29  ;;  %v841_v29 = vand.u32 4294901760, %v840_v27 }
  0x58   : > { %689 = vmatmul.f32.vlgmr.msrb.gmra.mxu1 %v647_v6 }
  0x59   : > { %745 = vmatmul.f32.vlgmr.msrb.gmra.mxu3 %v649_v14  ;;  %924 = vmatpush.msrb.mxu1 %v1377_v12  ;;  %v842_v31 = vsub.f32 %v840_v27, %v841_v29 }
  0x5a   : > { %982 = vmatpush.msrb.mxu3 %v1377_v12  ;;  %958 = vmatpush.msrb.mxu2 %v1438_v37  ;;  %v835_v12 = vand.u32 4294901760, %v834_v26 }
  0x5b   : > { %925 = vmatpush.msrb.mxu1 %v1379_v16  ;;  %v843_v32 = vand.u32 4294901760, %v842_v31 }
  0x5c   : > { %983 = vmatpush.msrb.mxu3 %v1379_v16  ;;  %652 = vmatmul.f32.vlgmr.msrb.gmra.mxu0 %v651_v20 }
  0x5d   : > { %896 = vmatpush.msrb.mxu0 %v1397_v22 }
  0x5e   : > { %722 = vmatmul.f32.gmra.mxu2 %v656_v4 }
  0x5f   : > { %898 = vmatpush.msrb.mxu0 %v1420_v30 }
  0x60   : > { %693 = vmatmul.f32.gmra.mxu1 %v655_v15 }
  0x61   : > { %751 = vmatmul.f32.gmra.mxu3 %v657_v21 }
  0x64   : > { %660 = vmatmul.f32.gmra.mxu0 %v659_v28 }
  0x66   : > { %836 = vmatmul.f32.vlgmr.msra.gmra.mxu2 %v835_v12 }
  0x68   : > { %801 = vmatmul.f32.vlgmr.msra.gmra.mxu1 %v647_v6 }
  0x69   : > { %873 = vmatmul.f32.vlgmr.msra.gmra.mxu3 %v831_v8 }
  0x6c   : > { %776 = vmatmul.f32.vlgmr.msra.gmra.mxu0 %v647_v6 }
  0x6e   : > { %844 = vmatmul.f32.gmra.mxu2 %v843_v32 }
  0x70   : > { %805 = vmatmul.f32.gmra.mxu1 %v655_v15 }
  0x71   : > { %877 = vmatmul.f32.gmra.mxu3 %v839_v25 }
  0x74   : > { %780 = vmatmul.f32.gmra.mxu0 %v655_v15 }
  0x76   : > { %960 = vmatmul.f32.vlgmr.msrb.gmra.mxu2 %v831_v8 }
  0x78   : > { %929 = vmatmul.f32.vlgmr.msrb.gmra.mxu1 %v833_v24 }
  0x79   : > { %985 = vmatmul.f32.vlgmr.msrb.gmra.mxu3 %v831_v8 }
  0x7c   : > { %901 = vmatmul.f32.vlgmr.msrb.gmra.mxu0 %v832_v18 }
  0x7e   : > { %964 = vmatmul.f32.gmra.mxu2 %v839_v25 }
  0x80   : > { %935 = vmatmul.f32.gmra.mxu1 %v841_v29 }
  0x81   : > { %989 = vmatmul.f32.gmra.mxu3 %v839_v25 }
  0x84   : > { %906 = vmatmul.f32.gmra.mxu0 %v840_v27 }
  0xa5   : > { %v322_v16 = vpop.f32.mrf.mxu1 }
  0xa9   : > { %v285_v22 = vpop.f32.mrf.mxu0  ;;  %v350_v30 = vpop.f32.mrf.mxu2 }
  0xaa   : > { %v323_v37 = vadd.f32 %v322_v16, %v285_v22 }
  0xac   : > { %v378_v33 = vpop.f32.mrf.mxu3  ;;  %v351_v39 = vadd.f32 %v350_v30, %v323_v37 }
  0xad   : > { %v326_v34 = vpop.f32.mrf.mxu1 }
  0xae   : > { %v379_v43 = vadd.f32 %v378_v33, %v351_v39 }
  0xb1   : > { %v293_v35 = vpop.f32.mrf.mxu0  ;;  %v355_v36 = vpop.f32.mrf.mxu2 }
  0xb2   : > { %v327_v44 = vadd.f32 %v326_v34, %v293_v35 }
  0xb4   : > { %v384_v38 = vpop.f32.mrf.mxu3  ;;  %v356_v47 = vadd.f32 %v355_v36, %v327_v44 }
  0xb5   : > { %v434_v40 = vpop.f32.mrf.mxu1 }
  0xb6   : > { %v385_v52 = vadd.f32 %v384_v38, %v356_v47 }
  0xb9   : > { %v409_v41 = vpop.f32.mrf.mxu0  ;;  %v469_v42 = vpop.f32.mrf.mxu2 }
  0xba   : > { %v410_v46 = vadd.f32 %v409_v41, %v379_v43 }
  0xbc   : > { %v506_v45 = vpop.f32.mrf.mxu3  ;;  %v435_v49 = vadd.f32 %v434_v40, %v410_v46 }
  0xbd   : > { %v438_v48 = vpop.f32.mrf.mxu1 }
  0xbe   : > { %v470_v54 = vadd.f32 %v469_v42, %v435_v49 }
  0xc0   : > { %v507_v57 = vadd.f32 %v506_v45, %v470_v54 }
  0xc1   : > { %v413_v50 = vpop.f32.mrf.mxu0  ;;  %v477_v51 = vpop.f32.mrf.mxu2 }
  0xc2   : > { %v414_v55 = vadd.f32 %v413_v50, %v385_v52 }
  0xc4   : > { %v510_v53 = vpop.f32.mrf.mxu3  ;;  %v439_v58 = vadd.f32 %v438_v48, %v414_v55 }
  0xc5   : > { %v562_v56 = vpop.f32.mrf.mxu1 }
  0xc6   : > { %v478_v63 = vadd.f32 %v477_v51, %v439_v58 }
  0xc8   : > { %v511_v5 = vadd.f32 %v510_v53, %v478_v63 }
  0xc9   : > { %v534_v59 = vpop.f32.mrf.mxu0  ;;  %v593_v60 = vpop.f32.mrf.mxu2 }
  0xca   : > { %v535_v61 = vadd.f32 %v534_v59, %v507_v57 }
  0xcc   : > { %v618_v62 = vpop.f32.mrf.mxu3  ;;  %v563_v0 = vadd.f32 %v562_v56, %v535_v61 }
  0xcd   : > { %v568_v2 = vpop.f32.mrf.mxu1 }
  0xce   : > { %v594_v1 = vadd.f32 %v593_v60, %v563_v0 }
  0xd0   : > { %v619_v6 = vadd.f32 %v618_v62, %v594_v1 }
  0xd1   : > { %v539_v9 = vpop.f32.mrf.mxu0  ;;  %v597_v7 = vpop.f32.mrf.mxu2 }
  0xd2   : > { %994 = vst.msk [vmem:[%s1508_s28] sm:$0xff] %vm993_vm1, %v619_v6  ;;  %v540_v10 = vadd.f32 %v539_v9, %v511_v5 }
  0xd4   : > { %v622_v13 = vpop.f32.mrf.mxu3  ;;  %v569_v3 = vadd.f32 %v568_v2, %v540_v10 }
  0xd5   : > { %v690_v15 = vpop.f32.mrf.mxu1 }
  0xd6   : > { %v598_v14 = vadd.f32 %v597_v7, %v569_v3 }
  0xd8   : > { %v623_v8 = vadd.f32 %v622_v13, %v598_v14 }
  0xd9   : > { %v653_v11 = vpop.f32.mrf.mxu0  ;;  %v718_v17 = vpop.f32.mrf.mxu2 }
  0xda   : > { %995 = vst.msk [vmem:[%s1508_s28 + $0x8] sm:$0xff] %vm993_vm1, %v623_v8  ;;  %v691_v21 = vadd.f32 %v690_v15, %v653_v11 }
  0xdc   : > { %v746_v4 = vpop.f32.mrf.mxu3  ;;  %v719_v25 = vadd.f32 %v718_v17, %v691_v21 }
  0xdd   : > { %v694_v18 = vpop.f32.mrf.mxu1 }
  0xde   : > { %v747_v28 = vadd.f32 %v746_v4, %v719_v25 }
  0xe1   : > { %v661_v19 = vpop.f32.mrf.mxu0  ;;  %v723_v20 = vpop.f32.mrf.mxu2 }
  0xe2   : > { %v695_v12 = vadd.f32 %v694_v18, %v661_v19 }
  0xe4   : > { %v752_v24 = vpop.f32.mrf.mxu3  ;;  %v724_v32 = vadd.f32 %v723_v20, %v695_v12 }
  0xe5   : > { %v802_v23 = vpop.f32.mrf.mxu1 }
  0xe6   : > { %v753_v34 = vadd.f32 %v752_v24, %v724_v32 }
  0xe9   : > { %v777_v26 = vpop.f32.mrf.mxu0  ;;  %v837_v27 = vpop.f32.mrf.mxu2 }
  0xea   : > { %v778_v31 = vadd.f32 %v777_v26, %v747_v28 }
  0xec   : > { %v874_v29 = vpop.f32.mrf.mxu3  ;;  %v803_v22 = vadd.f32 %v802_v23, %v778_v31 }
  0xed   : > { %v806_v16 = vpop.f32.mrf.mxu1 }
  0xee   : > { %v838_v36 = vadd.f32 %v837_v27, %v803_v22 }
  0xf0   : > { %v875_v39 = vadd.f32 %v874_v29, %v838_v36 }
  0xf1   : > { %v781_v30 = vpop.f32.mrf.mxu0  ;;  %v845_v33 = vpop.f32.mrf.mxu2 }
  0xf2   : > { %v782_v37 = vadd.f32 %v781_v30, %v753_v34 }
  0xf4   : > { %v878_v35 = vpop.f32.mrf.mxu3  ;;  %v807_v40 = vadd.f32 %v806_v16, %v782_v37 }
  0xf5   : > { %v930_v38 = vpop.f32.mrf.mxu1 }
  0xf6   : > { %v846_v45 = vadd.f32 %v845_v33, %v807_v40 }
  0xf8   : > { %v879_v48 = vadd.f32 %v878_v35, %v846_v45 }
  0xf9   : > { %v902_v41 = vpop.f32.mrf.mxu0  ;;  %v961_v42 = vpop.f32.mrf.mxu2 }
  0xfa   : > { %v903_v43 = vadd.f32 %v902_v41, %v875_v39 }
  0xfc   : > { %v986_v44 = vpop.f32.mrf.mxu3  ;;  %v931_v46 = vadd.f32 %v930_v38, %v903_v43 }
  0xfd   : > { %v936_v51 = vpop.f32.mrf.mxu1 }
  0xfe   : > { %v962_v47 = vadd.f32 %v961_v42, %v931_v46 }
 0x100   : > { %v987_v49 = vadd.f32 %v986_v44, %v962_v47 }
 0x101   : > { %v907_v50 = vpop.f32.mrf.mxu0  ;;  %v965_v53 = vpop.f32.mrf.mxu2 }
 0x102   : > { %v908_v52 = vadd.f32 %v907_v50, %v879_v48  ;;  %998 = vrot.lane.b32.xlu0 %v987_v49, %s1273_s15 }
 0x104   : > { %v937_v54 = vadd.f32 %v936_v51, %v908_v52  ;;  %v990_v55 = vpop.f32.mrf.mxu3 }
 0x106   : > { %v966_v56 = vadd.f32 %v965_v53, %v937_v54 }
 0x108   : > { %v991_v57 = vadd.f32 %v990_v55, %v966_v56 }
 0x10a   : > { %1000 = vrot.lane.b32.xlu0 %v991_v57, %s1273_s15 }
 0x174   : > { %v999_v58 = vpop.permute.xlu0 %998 }
 0x175   : > { %1005 = vst.msk [vmem:[%s1508_s28] sm:$0xff] %vm1004_vm2, %v999_v58 }
 0x17c   : > { %v1001_v59 = vpop.permute.xlu0 %1000 }
 0x17d   : > { %1006 = vst.msk [vmem:[%s1508_s28 + $0x8] sm:$0xff] %vm1004_vm2, %v1001_v59 }
 0x17e PF: > { %s16_s17 = sadd.s32 1, %s1269_s17   ;;  %s1538_s12 = smov %s1253_s13 }
 0x17f   : > { %p13_p0 = scmp.ge.s32.totalorder %s16_s17, 4   ;;  %s1539_s13 = smov %s1257_s14 }
 0x180   : > { %s1540_s14 = smov %s1343_s24  ;;  %s1541_s15 = smov %s1265_s16 }
 0x181   : > { %s1542_s16 = smov %s1544_s19  ;;  %15 = sbr.rel (!%p13_p0) target bundleno = 4 (0x4), region = 75 }
 0x186   :  { %1037 = vsyncpa [#allocation3], 1 }
 0x187   :  { %1039 = vsyncpa [#allocation3 + $0x1], 1 }

</bundles_post_ra>
